<compile_context>
chip_gen: v5e
topology: v5e:2x2
jax: 0.10.0
libtpu: 0.0.40
codegen_flags: <defaults>
</compile_context>

<pallas_src>
import jax
import jax.numpy as jnp
from jax.experimental import pallas as pl
from jax.experimental.pallas import tpu as pltpu


def _value_net_kernel(xt_ref, w1t_ref, b1_ref, w2t_ref, b2_ref, w3t_ref,
                      b3_ref, o_ref):
    # xt_ref: (S, TM) f32 tile of x^T (features on sublanes, batch on lanes)
    xt = xt_ref[...].astype(jnp.bfloat16)                         # (S, TM)

    # Layer 1: (64, S) @ (S, TM) -> (64, TM), f32 accumulation on the MXU.
    h1 = jnp.dot(w1t_ref[...], xt, preferred_element_type=jnp.float32)
    h1 = jnp.tanh(h1 + b1_ref[...])                               # b1: (64, 1)

    # Layer 2: (64, 64) @ (64, TM) -> (64, TM)
    h2 = jnp.dot(w2t_ref[...], h1.astype(jnp.bfloat16),
                 preferred_element_type=jnp.float32)
    h2 = jnp.tanh(h2 + b2_ref[...])                               # b2: (64, 1)

    # Layer 3: (1, 64) @ (64, TM) -> (1, TM)  (lane-dense output slab)
    out = jnp.dot(w3t_ref[...], h2.astype(jnp.bfloat16),
                  preferred_element_type=jnp.float32)
    o_ref[...] = (out + b3_ref[0]).astype(o_ref.dtype)            # b3 scalar in SMEM


def value_network_forward(state, params, *, tm=512):
    """state: (B, state_dim) f32.  params: dict of W1,b1,W2,b2,W3,b3 with
    W stored as (in_features, out_features), i.e. y = x @ W + b."""
    B, S = state.shape
    H = params["W1"].shape[1]          # 64

    # Batch tile: multiple of 128 lanes, no larger than (padded) batch,
    # capped at `tm` (default 512; safe for v5e 16 MiB scoped / v7x 64 MiB VMEM).
    b128 = ((B + 127) // 128) * 128
    tm = max(128, min(((tm + 127) // 128) * 128, b128))
    b_pad = ((B + tm - 1) // tm) * tm
    grid = (b_pad // tm,)

    # Feature-major activations: (S, B_pad); zero-padded tail rows are sliced off.
    xt = jnp.pad(state.astype(jnp.float32), ((0, b_pad - B), (0, 0))).T

    # Transposed weights, bf16 operands for the MXU (f32 accumulation in-kernel).
    w1t = params["W1"].T.astype(jnp.bfloat16)                  # (64, S)
    w2t = params["W2"].T.astype(jnp.bfloat16)                  # (64, 64)
    w3t = params["W3"].T.astype(jnp.bfloat16)                  # (1, 64)
    b1 = params["b1"].reshape(-1, 1).astype(jnp.float32)       # (64, 1)
    b2 = params["b2"].reshape(-1, 1).astype(jnp.float32)       # (64, 1)
    b3 = params["b3"].reshape(-1).astype(jnp.float32)          # (1,)  -> SMEM

    # Weights/biases: full blocks with constant index_map -> VMEM-resident.
    full = lambda a: pl.BlockSpec(a.shape, lambda i: (0,) * a.ndim)

    flops = 2 * b_pad * (S * H + H * H + H)
    bytes_accessed = ((xt.size + b_pad) * 4                       # x^T in, out
                      + (w1t.size + w2t.size + w3t.size) * 2      # bf16 weights
                      + (b1.size + b2.size + b3.size) * 4)

    out = pl.pallas_call(
        _value_net_kernel,
        out_shape=jax.ShapeDtypeStruct((1, b_pad), jnp.float32),
        grid=grid,
        in_specs=[
            pl.BlockSpec((S, tm), lambda i: (0, i)),              # x^T batch tile
            full(w1t), full(b1),
            full(w2t), full(b2),
            full(w3t),
            pl.BlockSpec(memory_space=pltpu.MemorySpace.SMEM),    # b3 scalar
        ],
        out_specs=pl.BlockSpec((1, tm), lambda i: (0, i)),        # lane-dense
        compiler_params=pltpu.CompilerParams(
            dimension_semantics=("parallel",),                    # dual-TC on v7x
            vmem_limit_bytes=32 * 1024 * 1024,
        ),
        cost_estimate=pl.CostEstimate(
            flops=flops,
            transcendentals=2 * H * b_pad,
            bytes_accessed=bytes_accessed,
        ),
    )(xt, w1t, b1, w2t, b2, w3t, b3)

    return out[0, :B].reshape(B, 1)


def init_params(key, state_dim):
    """Deterministic init mirroring nn.Linear default (uniform +-1/sqrt(fan_in))."""
    ks = jax.random.split(key, 6)

    def lin(kw, kb, fan_in, fan_out):
        bound = 1.0 / jnp.sqrt(jnp.float32(fan_in))
        W = jax.random.uniform(kw, (fan_in, fan_out), jnp.float32, -bound, bound)
        b = jax.random.uniform(kb, (fan_out,), jnp.float32, -bound, bound)
        return W, b

    W1, b1 = lin(ks[0], ks[1], state_dim, 64)
    W2, b2 = lin(ks[2], ks[3], 64, 64)
    W3, b3 = lin(ks[4], ks[5], 64, 1)
    return {"W1": W1, "b1": b1, "W2": W2, "b2": b2, "W3": W3, "b3": b3}


def reference_forward(state, params):
    """Pure f32 reference (kernel uses bf16 MXU operands, f32 accumulation)."""
    h1 = jnp.tanh(state @ params["W1"] + params["b1"])
    h2 = jnp.tanh(h1 @ params["W2"] + params["b2"])
    return h2 @ params["W3"] + params["b3"]


if __name__ == "__main__":
    key = jax.random.PRNGKey(0)
    k_param, k_state = jax.random.split(key)

    batch, state_dim = 8, 8                      # small, consistent with module
    params = init_params(k_param, state_dim)
    state = jax.random.normal(k_state, (batch, state_dim), jnp.float32)

    out = value_network_forward(state, params)
    out = jax.block_until_ready(out)

    ref = reference_forward(state, params)
    assert out.shape == (batch, 1)
    # bf16 MXU operands with f32 accumulation -> loosened tolerance vs f32 ref.
    assert jnp.allclose(out, ref, atol=5e-2, rtol=5e-2), "mismatch vs reference"

    print("KERNEL_OK")
</pallas_src>

<mosaic_0001>
module attributes {stable_mosaic.version = 11 : i64} {
  func.func @_value_net_kernel(%arg0: i32, %arg1: memref<8x128xf32, #tpu.memory_space<vmem>>, %arg2: memref<64x8xbf16, #tpu.memory_space<vmem>>, %arg3: memref<64x1xf32, #tpu.memory_space<vmem>>, %arg4: memref<64x64xbf16, #tpu.memory_space<vmem>>, %arg5: memref<64x1xf32, #tpu.memory_space<vmem>>, %arg6: memref<1x64xbf16, #tpu.memory_space<vmem>>, %arg7: memref<1xf32, #tpu.memory_space<smem>>, %arg8: memref<1x128xf32, #tpu.memory_space<vmem>>) attributes {dimension_semantics = [#tpu.dimension_semantics<parallel>], iteration_bounds = array<i64: 1>, scalar_prefetch = 0 : i64, scratch_operands = 0 : i64, tpu.core_type = #tpu.core_type<tc>, window_params = [{transform_indices = @transform_0, window_bounds = array<i64: 8, 128>}, {pipeline_mode = #tpu.pipeline_mode<synchronous>, transform_indices = @transform_1, window_bounds = array<i64: 64, 8>}, {pipeline_mode = #tpu.pipeline_mode<synchronous>, transform_indices = @transform_2, window_bounds = array<i64: 64, 1>}, {pipeline_mode = #tpu.pipeline_mode<synchronous>, transform_indices = @transform_3, window_bounds = array<i64: 64, 64>}, {pipeline_mode = #tpu.pipeline_mode<synchronous>, transform_indices = @transform_4, window_bounds = array<i64: 64, 1>}, {pipeline_mode = #tpu.pipeline_mode<synchronous>, transform_indices = @transform_5, window_bounds = array<i64: 1, 64>}, {transform_indices = @transform_6, window_bounds = array<i64: 1>}, {transform_indices = @transform_7, window_bounds = array<i64: 1, 128>}]} {
    %c0 = arith.constant 0 : index
    %c0_0 = arith.constant 0 : index
    %0 = vector.load %arg1[%c0, %c0_0] : memref<8x128xf32, #tpu.memory_space<vmem>>, vector<8x128xf32>
    %1 = arith.truncf %0 : vector<8x128xf32> to vector<8x128xbf16>
    %c0_1 = arith.constant 0 : index
    %c0_2 = arith.constant 0 : index
    %2 = vector.load %arg2[%c0_1, %c0_2] : memref<64x8xbf16, #tpu.memory_space<vmem>>, vector<64x8xbf16>
    %cst = arith.constant dense<0.000000e+00> : vector<64x128xf32>
    %3 = tpu.matmul %2, %1, %cst {dimension_numbers = #tpu.dot_dimension_numbers<[1], [0], [0], [1], [0, 0, 1, 1], [], []>} : vector<64x8xbf16>, vector<8x128xbf16>, vector<64x128xf32> -> vector<64x128xf32>
    %c0_3 = arith.constant 0 : index
    %c0_4 = arith.constant 0 : index
    %4 = vector.load %arg3[%c0_3, %c0_4] : memref<64x1xf32, #tpu.memory_space<vmem>>, vector<64x1xf32>
    %5 = vector.broadcast %4 : vector<64x1xf32> to vector<64x128xf32>
    %6 = arith.addf %3, %5 : vector<64x128xf32>
    %7 = math.tanh %6 : vector<64x128xf32>
    %c0_5 = arith.constant 0 : index
    %c0_6 = arith.constant 0 : index
    %8 = vector.load %arg4[%c0_5, %c0_6] : memref<64x64xbf16, #tpu.memory_space<vmem>>, vector<64x64xbf16>
    %9 = arith.truncf %7 : vector<64x128xf32> to vector<64x128xbf16>
    %cst_7 = arith.constant dense<0.000000e+00> : vector<64x128xf32>
    %10 = tpu.matmul %8, %9, %cst_7 {dimension_numbers = #tpu.dot_dimension_numbers<[1], [0], [0], [1], [0, 0, 1, 1], [], []>} : vector<64x64xbf16>, vector<64x128xbf16>, vector<64x128xf32> -> vector<64x128xf32>
    %c0_8 = arith.constant 0 : index
    %c0_9 = arith.constant 0 : index
    %11 = vector.load %arg5[%c0_8, %c0_9] : memref<64x1xf32, #tpu.memory_space<vmem>>, vector<64x1xf32>
    %12 = vector.broadcast %11 : vector<64x1xf32> to vector<64x128xf32>
    %13 = arith.addf %10, %12 : vector<64x128xf32>
    %14 = math.tanh %13 : vector<64x128xf32>
    %c0_10 = arith.constant 0 : index
    %c0_11 = arith.constant 0 : index
    %15 = vector.load %arg6[%c0_10, %c0_11] : memref<1x64xbf16, #tpu.memory_space<vmem>>, vector<1x64xbf16>
    %16 = arith.truncf %14 : vector<64x128xf32> to vector<64x128xbf16>
    %cst_12 = arith.constant dense<0.000000e+00> : vector<1x128xf32>
    %17 = tpu.matmul %15, %16, %cst_12 {dimension_numbers = #tpu.dot_dimension_numbers<[1], [0], [0], [1], [0, 0, 1, 1], [], []>} : vector<1x64xbf16>, vector<64x128xbf16>, vector<1x128xf32> -> vector<1x128xf32>
    %c0_13 = arith.constant 0 : index
    %18 = memref.load %arg7[%c0_13] : memref<1xf32, #tpu.memory_space<smem>>
    %19 = vector.broadcast %18 : f32 to vector<1x128xf32>
    %20 = arith.addf %17, %19 : vector<1x128xf32>
    %c0_14 = arith.constant 0 : index
    %c0_15 = arith.constant 0 : index
    %21 = vector.load %arg8[%c0_14, %c0_15] : memref<1x128xf32, #tpu.memory_space<vmem>>, vector<1x128xf32>
    tpu.vector_store %arg8[%c0_14, %c0_15], %20 {strides = array<i32>} : memref<1x128xf32, #tpu.memory_space<vmem>>, vector<1x128xf32>,
    return
  }
  func.func @transform_0(%arg0: i32) -> (i32, i32) {
    %c0_i32 = arith.constant 0 : i32
    %c0_i32_0 = arith.constant 0 : i32
    return %c0_i32, %arg0 : i32, i32
  }
  func.func @transform_1(%arg0: i32) -> (i32, i32) {
    %c0_i32 = arith.constant 0 : i32
    %c0_i32_0 = arith.constant 0 : i32
    %c0_i32_1 = arith.constant 0 : i32
    return %c0_i32, %c0_i32_0 : i32, i32
  }
  func.func @transform_2(%arg0: i32) -> (i32, i32) {
    %c0_i32 = arith.constant 0 : i32
    %c0_i32_0 = arith.constant 0 : i32
    %c0_i32_1 = arith.constant 0 : i32
    return %c0_i32, %c0_i32_0 : i32, i32
  }
  func.func @transform_3(%arg0: i32) -> (i32, i32) {
    %c0_i32 = arith.constant 0 : i32
    %c0_i32_0 = arith.constant 0 : i32
    %c0_i32_1 = arith.constant 0 : i32
    return %c0_i32, %c0_i32_0 : i32, i32
  }
  func.func @transform_4(%arg0: i32) -> (i32, i32) {
    %c0_i32 = arith.constant 0 : i32
    %c0_i32_0 = arith.constant 0 : i32
    %c0_i32_1 = arith.constant 0 : i32
    return %c0_i32, %c0_i32_0 : i32, i32
  }
  func.func @transform_5(%arg0: i32) -> (i32, i32) {
    %c0_i32 = arith.constant 0 : i32
    %c0_i32_0 = arith.constant 0 : i32
    %c0_i32_1 = arith.constant 0 : i32
    return %c0_i32, %c0_i32_0 : i32, i32
  }
  func.func @transform_6(%arg0: i32) -> i32 {
    %c0_i32 = arith.constant 0 : i32
    %c0_i32_0 = arith.constant 0 : i32
    return %c0_i32 : i32
  }
  func.func @transform_7(%arg0: i32) -> (i32, i32) {
    %c0_i32 = arith.constant 0 : i32
    %c0_i32_0 = arith.constant 0 : i32
    return %c0_i32, %arg0 : i32, i32
  }
}

</mosaic_0001>

<bundles_post_ra>
// kernel: tpu_custom_call.1
= control target key start
LH: loop header
LB: loop body
LE: loop exit
PB: predicated region body
PF: predicated region fallthrough
CT: control target
= control target key end

     0   :  { %vm120_vm0 = vcmask 1043456   ;;  %v452_v2 = vmov 0   ;;  %vm107_vm1 = vcmask 64512   ;;  %s587_s0 = inlined_call_operand.vmem [shape: f32[8,128], index: 0, kind: input, shape index: {}]   ;;  %s588_s1 = inlined_call_operand.vmem [shape: bf16[64,8], index: 1, kind: input, shape index: {}]   ;;  %s589_s2 = inlined_call_operand.vmem [shape: f32[64,1], index: 2, kind: input, shape index: {}]   ;;  %s590_s3 = inlined_call_operand.vmem [shape: bf16[64,64], index: 3, kind: input, shape index: {}]   ;;  %s591_s4 = inlined_call_operand.vmem [shape: f32[64,1], index: 4, kind: input, shape index: {}]   ;;  %s592_s5 = inlined_call_operand.vmem [shape: bf16[1,64], index: 5, kind: input, shape index: {}]   ;;  %s593_s6 = inlined_call_operand.<no memory space> [shape: f32[1], index: 6, kind: input, shape index: {}]   ;;  %s594_s7 = inlined_call_operand.hbm [shape: f32[1,128], index: 7, kind: output, shape index: {}]  }
   0x1   :  { %v45_v0 = vld [vmem:[%s589_s2 + $0x30] sm:$0xff]  ;;  %v29_v1 = vld [vmem:[%s587_s0] sm:$0xff]  ;;  %391 = vset.pattern.permute.xlu0 %v452_v2  ;;  %392 = vset.pattern.permute.xlu1 %v452_v2  ;;  %v375_v7 = vld [vmem:[%s588_s1 + $0x18] sm:$0xff] }
   0x2   :  { %v30_v3 = vpack.c.bf16 %v29_v1, %v29_v1  ;;  %v43_v4 = vld [vmem:[%s589_s2 + $0x20] sm:$0xff]  ;;  %79 = vperm.xlu0 %391, %v45_v0   ;;  %393 = vset.pattern.permute.xlu2 %v452_v2 }
   0x3   :  { %69 = vperm.xlu1 %392, %v43_v4   ;;  %v372_v6 = vld [vmem:[%s588_s1] sm:$0xff] }
   0x4   :  { %v122_v5 = vsel %vm120_vm0, %v30_v3, 0 }
   0x5   :  { %131 = vmatpush.bf16.msra.mxu0 %v122_v5  ;;  %380 = vmatpush.bf16.msra.mxu1 %v122_v5 }
   0x6   :  { %13 = vsyncpa [#allocation4], 0  ;;  %v46_v8 = vld [vmem:[%s589_s2 + $0x38] sm:$0xff]  ;;  %v44_v9 = vld [vmem:[%s589_s2 + $0x28] sm:$0xff]  ;;  %vm241_vm2 = vcmask 523264   ;;  %s453_s26 = smov [#allocation3]  }
   0x7   :  { %v41_v10 = vld [vmem:[%s589_s2 + $0x10] sm:$0xff]  ;;  %v42_v11 = vld [vmem:[%s589_s2 + $0x18] sm:$0xff]  ;;  %v39_v12 = vld [vmem:[%s589_s2] sm:$0xff]  ;;  %s320_s27 = sshll.u32 %s453_s26, 4  ;;  %s321_s27 = int_to_ptr.vmem [resolvable:$true] %s320_s27 }
   0x8   :  { %347 = vmatmul.msk.bf16.vlgmr.msra.gmra.mxu0 %vm107_vm1, %v372_v6  ;;  %350 = vmatmul.msk.bf16.vlgmr.msra.gmra.mxu1 %vm107_vm1, %v375_v7  ;;  %v40_v13 = vld [vmem:[%s589_s2 + $0x8] sm:$0xff]  ;;  %v179_v15 = vld [vmem:[%s591_s4 + $0x30] sm:$0xff]  ;;  %v180_v16 = vld [vmem:[%s591_s4 + $0x38] sm:$0xff]  ;;  %s322_s2 = sshll.u32 %s594_s7, 4  ;;  %s323_s2 = int_to_ptr.hbm [resolvable:$true] %s322_s2 }
   0x9   :  { %59 = vperm.xlu2 %393, %v41_v10   ;;  %v373_v14 = vld [vmem:[%s588_s1 + $0x8] sm:$0xff]  ;;  %v177_v17 = vld [vmem:[%s591_s4 + $0x20] sm:$0xff]  ;;  %v175_v19 = vld [vmem:[%s591_s4 + $0x10] sm:$0xff] }
   0xa   :  { %84 = vperm.xlu0 %391, %v46_v8   ;;  %v178_v18 = vld [vmem:[%s591_s4 + $0x28] sm:$0xff]  ;;  %v176_v20 = vld [vmem:[%s591_s4 + $0x18] sm:$0xff]  ;;  %v374_v21 = vld [vmem:[%s588_s1 + $0x10] sm:$0xff] }
   0xb   :  { %74 = vperm.xlu1 %392, %v44_v9   ;;  %v173_v22 = vld [vmem:[%s591_s4] sm:$0xff]  ;;  %v174_v23 = vld [vmem:[%s591_s4 + $0x8] sm:$0xff]  ;;  %v378_v62 = vld [vmem:[%s590_s3 + $0x10] sm:$0xff] }
   0xc   :  { %v376_v60 = vld [vmem:[%s590_s3] sm:$0xff]  ;;  %v377_v61 = vld [vmem:[%s590_s3 + $0x8] sm:$0xff]  ;;  %v379_v63 = vld [vmem:[%s590_s3 + $0x18] sm:$0xff] }
  0x11   :  { %64 = vperm.xlu2 %393, %v42_v11  }
  0x12   :  { %49 = vperm.xlu0 %391, %v39_v12  }
  0x13   :  { %54 = vperm.xlu1 %392, %v40_v13  }
  0x18   :  { %348 = vmatmul.msk.bf16.gmra.mxu0 %vm107_vm1, %v373_v14 }
  0x19   :  { %213 = vperm.xlu2 %393, %v179_v15  }
  0x1a   :  { %218 = vperm.xlu0 %391, %v180_v16  }
  0x1b   :  { %203 = vperm.xlu1 %392, %v177_v17  }
  0x21   :  { %208 = vperm.xlu2 %393, %v178_v18  }
  0x22   :  { %193 = vperm.xlu0 %391, %v175_v19  }
  0x23   :  { %198 = vperm.xlu1 %392, %v176_v20  }
  0x28   :  { %349 = vmatmul.msk.bf16.gmra.mxu0 %vm107_vm1, %v374_v21 }
  0x29   :  { %183 = vperm.xlu2 %393, %v173_v22  }
  0x2a   :  { %188 = vperm.xlu0 %391, %v174_v23  }
  0x63   :  { %v60_v38 = vpop.permute.xlu2 %59 }
  0x6b   :  { %v65_v42 = vpop.permute.xlu2 %64 }
  0x73   :  { %v214_v3 = vpop.permute.xlu2 %213 }
  0x74   :  { %v80_v24 = vpop.permute.xlu0 %79 }
  0x75   :  { %v70_v36 = vpop.permute.xlu1 %69 }
  0x7b   :  { %v209_v10 = vpop.permute.xlu2 %208 }
  0x7c   :  { %v85_v29 = vpop.permute.xlu0 %84 }
  0x7d   :  { %v75_v39 = vpop.permute.xlu1 %74 }
  0x84   :  { %v50_v48 = vpop.permute.xlu0 %49 }
  0x85   :  { %v133_v25 = vpop.f32.mrf.mxu0  ;;  %v148_v26 = vpop.f32.mrf.mxu1 }
  0x86   :  { %v149_v27 = vadd.f32 %v148_v26, %v80_v24  ;;  %v55_v46 = vpop.permute.xlu1 %54  ;;  %v134_v50 = vadd.f32 %v133_v25, %v50_v48  ;;  %v184_v24 = vpop.permute.xlu2 %183 }
  0x88   :  { %394 = vtanh.f32 %v149_v27 }
  0x8c   :  { %v219_v2 = vpop.permute.xlu0 %218 }
  0x8d   :  { %v135_v28 = vpop.f32.mrf.mxu0  ;;  %v150_v30 = vpop.f32.mrf.mxu1 }
  0x8e   :  { %v151_v31 = vadd.f32 %v150_v30, %v85_v29  ;;  %v395_v32 = vpop.eup %394  ;;  %v136_v49 = vadd.f32 %v135_v28, %v55_v46  ;;  %v204_v6 = vpop.permute.xlu1 %203 }
  0x90   :  { %396 = vtanh.f32 %v151_v31 }
  0x94   :  { %v194_v8 = vpop.permute.xlu0 %193 }
  0x95   :  { %v138_v33 = vpop.f32.mrf.mxu0 }
  0x96   :  { %v397_v34 = vpop.eup %396  ;;  %v139_v47 = vadd.f32 %v138_v33, %v60_v38  ;;  %v199_v16 = vpop.permute.xlu1 %198 }
  0x97   :  { %v172_v35 = vpack.c.bf16 %v397_v34, %v395_v32 }
  0x99   :  { %258 = vmatpush.bf16.msrb.mxu1 %v172_v35  ;;  %381 = vmatpush.bf16.msra.mxu2 %v172_v35 }
  0x9a   :  { %382 = vmatpush.bf16.msra.mxu3 %v172_v35 }
  0x9c   :  { %v189_v21 = vpop.permute.xlu0 %188 }
  0x9d   :  { %v140_v37 = vpop.f32.mrf.mxu0 }
  0x9e   :  { %v141_v44 = vadd.f32 %v140_v37, %v65_v42  ;;  %v297_v37 = vstv %s593_s6 }
  0xa5   :  { %v143_v40 = vpop.f32.mrf.mxu0 }
  0xa6   :  { %v144_v41 = vadd.f32 %v143_v40, %v70_v36  ;;  %v291_v36 = vld [vmem:[%s592_s5] sm:$0x1] }
  0xa8   :  { %398 = vtanh.f32 %v144_v41 }
  0xad   :  { %v145_v43 = vpop.f32.mrf.mxu0 }
  0xae   :  { %v146_v45 = vadd.f32 %v145_v43, %v75_v39  ;;  %v399_v51 = vpop.eup %398 }
  0xb0   :  { %400 = vtanh.f32 %v146_v45 }
  0xb1   :  { %402 = vtanh.f32 %v141_v44 }
  0xb2   :  { %404 = vtanh.f32 %v139_v47 }
  0xb3   :  { %406 = vtanh.f32 %v136_v49 }
  0xb4   :  { %408 = vtanh.f32 %v134_v50 }
  0xb6   :  { %v401_v52 = vpop.eup %400 }
  0xb7   :  { %v171_v53 = vpack.c.bf16 %v401_v52, %v399_v51  ;;  %v403_v54 = vpop.eup %402 }
  0xb8   :  { %v405_v55 = vpop.eup %404 }
  0xb9   :  { %259 = vmatpush.bf16.msrb.mxu1 %v171_v53  ;;  %383 = vmatpush.bf16.msra.mxu2 %v171_v53  ;;  %v170_v56 = vpack.c.bf16 %v403_v54, %v405_v55  ;;  %v407_v57 = vpop.eup %406 }
  0xba   :  { %384 = vmatpush.bf16.msra.mxu3 %v171_v53  ;;  %v409_v58 = vpop.eup %408 }
  0xbb   :  { %v169_v59 = vpack.c.bf16 %v407_v57, %v409_v58 }
  0xbd   :  { %260 = vmatpush.bf16.msrb.mxu1 %v170_v56  ;;  %385 = vmatpush.bf16.msra.mxu2 %v170_v56 }
  0xbe   :  { %386 = vmatpush.bf16.msra.mxu3 %v170_v56 }
  0xc1   :  { %261 = vmatpush.bf16.msrb.mxu1 %v169_v59  ;;  %387 = vmatpush.bf16.msra.mxu2 %v169_v59 }
  0xc2   :  { %388 = vmatpush.bf16.msra.mxu3 %v169_v59 }
  0xc4   :  { %367 = vmatmul.msk.bf16.vlgmr.msrb.gmra.mxu1 %vm241_vm2, %v376_v60  ;;  %368 = vmatmul.msk.bf16.vlgmr.msra.gmra.mxu2 %vm241_vm2, %v377_v61 }
  0xc5   :  { %369 = vmatmul.msk.bf16.vlgmr.msra.gmra.mxu3 %vm241_vm2, %v378_v62 }
  0xd5   :  { %370 = vmatmul.msk.bf16.gmra.mxu3 %vm241_vm2, %v379_v63 }
 0x141   :  { %v263_v7 = vpop.f32.mrf.mxu1 }
 0x142   :  { %v264_v27 = vadd.f32 %v263_v7, %v184_v24 }
 0x147   :  { %v268_v4 = vpop.f32.mrf.mxu2 }
 0x148   :  { %v273_v0 = vpop.f32.mrf.mxu3  ;;  %v269_v19 = vadd.f32 %v268_v4, %v194_v8 }
 0x149   :  { %v274_v15 = vadd.f32 %v273_v0, %v204_v6  ;;  %v265_v18 = vpop.f32.mrf.mxu1 }
 0x14a   :  { %v266_v23 = vadd.f32 %v265_v18, %v189_v21 }
 0x14f   :  { %v270_v14 = vpop.f32.mrf.mxu2 }
 0x150   :  { %v275_v1 = vpop.f32.mrf.mxu3  ;;  %v271_v17 = vadd.f32 %v270_v14, %v199_v16 }
 0x151   :  { %v276_v12 = vadd.f32 %v275_v1, %v209_v10 }
 0x158   :  { %v278_v5 = vpop.f32.mrf.mxu3 }
 0x159   :  { %v279_v9 = vadd.f32 %v278_v5, %v214_v3 }
 0x15b   :  { %410 = vtanh.f32 %v279_v9 }
 0x160   :  { %v280_v11 = vpop.f32.mrf.mxu3 }
 0x161   :  { %v281_v13 = vadd.f32 %v280_v11, %v219_v2  ;;  %v411_v20 = vpop.eup %410 }
 0x163   :  { %412 = vtanh.f32 %v281_v13 }
 0x164   :  { %414 = vtanh.f32 %v276_v12 }
 0x165   :  { %416 = vtanh.f32 %v274_v15 }
 0x166   :  { %418 = vtanh.f32 %v271_v17 }
 0x167   :  { %420 = vtanh.f32 %v269_v19 }
 0x168   :  { %422 = vtanh.f32 %v266_v23 }
 0x169   :  { %v413_v22 = vpop.eup %412  ;;  %424 = vtanh.f32 %v264_v27 }
 0x16a   :  { %v295_v25 = vpack.c.bf16 %v413_v22, %v411_v20  ;;  %v415_v26 = vpop.eup %414 }
 0x16b   :  { %v417_v28 = vpop.eup %416 }
 0x16c   :  { %305 = vmatpush.bf16.msrb.mxu2 %v295_v25  ;;  %v294_v29 = vpack.c.bf16 %v415_v26, %v417_v28  ;;  %v419_v30 = vpop.eup %418 }
 0x16d   :  { %v421_v31 = vpop.eup %420 }
 0x16e   :  { %v293_v32 = vpack.c.bf16 %v419_v30, %v421_v31  ;;  %v423_v33 = vpop.eup %422 }
 0x16f   :  { %v425_v34 = vpop.eup %424 }
 0x170   :  { %306 = vmatpush.bf16.msrb.mxu2 %v294_v29  ;;  %v292_v35 = vpack.c.bf16 %v423_v33, %v425_v34 }
 0x174   :  { %307 = vmatpush.bf16.msrb.mxu2 %v293_v32 }
 0x178   :  { %308 = vmatpush.bf16.msrb.mxu2 %v292_v35 }
 0x17b   :  { %371 = vmatmul.msk.bf16.vlgmr.msrb.gmra.mxu2 %vm241_vm2, %v291_v36 }
 0x1fe   :  { %v310_v38 = vpop.f32.mrf.mxu2 }
 0x1ff   :  { %v311_v39 = vadd.f32 %v310_v38, %v297_v37 }
 0x201   :  { %314 = vst [vmem:[#allocation3] sm:$0x1] %v311_v39 }
 0x202   :  { %325 = dma.vmem_to_hbm [thread:$0]  %s321_s27, 16, %s323_s2, [#allocation4]  }
 0x206   :  { %v312_v40 = vpop.f32.mrf.mxu2 }
 0x207   :  { %450 = dma.done.wait [#allocation4], 16  }
 0x208   :  { %451 = vsyncadd [#allocation4], 4294967280 }
 0x209   :  { %330 = vsyncpa [#allocation4], 1 }

</bundles_post_ra>
